<compile_context>
chip_gen: v7x
topology: tpu7x:2x2x1
jax: 0.10.0
libtpu: 0.0.40
codegen_flags: <defaults>
</compile_context>

<pallas_src>
import functools

import jax
import jax.numpy as jnp
from jax.experimental import pallas as pl
from jax.experimental.pallas import tpu as pltpu


def _label_smoothing_kernel(n_ref, x_ref, tgt_ref, out_ref, *, smoothing, tile_n):
    i = pl.program_id(0)
    confidence = 1.0 - smoothing

    x = x_ref[...]                                   # (TILE_N, C), native dtype
    tn, c = x.shape
    tgt = tgt_ref[...]                               # (TILE_N, 1) int32

    # Row-wise log-sum-exp (numerically stable); only the exp/log path runs in f32.
    m = jnp.max(x, axis=-1, keepdims=True)                         # (TILE_N, 1)
    p = jnp.exp((x - m).astype(jnp.float32))                       # (TILE_N, C) f32
    se = jnp.sum(p, axis=-1, keepdims=True)                        # (TILE_N, 1) f32
    lse = m.astype(jnp.float32) + jnp.log(se)                      # (TILE_N, 1) f32

    # gather(dim=-1, index=target) via compare/select in the native dtype with f32
    # accumulation; the (1, C) iota broadcasts against the (TILE_N, 1) targets.
    col = jax.lax.broadcasted_iota(jnp.int32, (1, c), 1)
    x_tgt = jnp.sum(jnp.where(col == tgt, x, 0.0), axis=-1, keepdims=True,
                    dtype=jnp.float32)                             # (TILE_N, 1) f32

    # loss_row = lse - conf*x[tgt] - (s/C)*sum(x)   (conf + s == 1)
    loss = lse - confidence * x_tgt
    if smoothing != 0.0:                             # compile-time specialization
        sum_x = jnp.sum(x, axis=-1, keepdims=True, dtype=jnp.float32)
        loss = loss - (smoothing / c) * sum_x

    # Mask rows past the true batch size (last block may be partial / contain garbage).
    row = jax.lax.broadcasted_iota(jnp.int32, (tn, 1), 0) + i * tile_n
    loss = jnp.where(row < n_ref[0], loss, 0.0)

    # Independent per-tile partial sum, written as a lane-dense block (unmasked stores).
    out_ref[...] = jnp.broadcast_to(jnp.sum(loss), out_ref.shape)


def _vmem_limit_bytes():
    try:
        cap = int(pltpu.get_tpu_info().vmem_capacity_bytes)
    except Exception:
        cap = 64 * 1024 * 1024                       # conservative (v7x per-TC VMEM)
    limit = max(16 * 1024 * 1024, min(int(0.45 * cap), 64 * 1024 * 1024))
    return limit, cap


def _choose_tile_n(n, c, itemsize, vmem_limit, vmem_capacity):
    # Live bytes/row inside the kernel: 2 double-buffered native-dtype DMA rows plus
    # ~12 B/elem of f32 intermediates (x - m, exp temp, select temp).
    bytes_per_row = max(c * (2 * itemsize + 12), 1)
    tile_n = (6 * vmem_limit // 10) // bytes_per_row
    # Cap by DMA-block BYTES (4 MiB on v7x, 8 MiB on v5e/v6e), not by a row count, so
    # small-C workloads still get >=4 MiB blocks (~85% of the HBM roofline).
    block_cap = (4 if vmem_capacity <= 64 * 1024 * 1024 else 8) * 1024 * 1024
    tile_n = min(tile_n, block_cap // max(c * itemsize, 1))
    tile_n = min(tile_n, -(-n // 8) * 8)             # no point exceeding (rounded-up) N
    tile_n = max(8, (tile_n // 8) * 8)               # sublane multiple
    return int(tile_n)


def label_smoothing_loss(x, target, smoothing=0.0, tile_n=None):
    """x: (N, C) float logits; target: (N,) int class indices. Returns scalar f32 mean loss."""
    n, c = x.shape
    vmem_limit, vmem_cap = _vmem_limit_bytes()
    if tile_n is None:
        tile_n = _choose_tile_n(n, c, x.dtype.itemsize, vmem_limit, vmem_cap)

    num_tiles = -(-n // tile_n)
    tgt2d = target.reshape(n, 1).astype(jnp.int32)
    n_true = jnp.array([n], dtype=jnp.int32)

    kernel = functools.partial(_label_smoothing_kernel,
                               smoothing=float(smoothing), tile_n=tile_n)

    partials = pl.pallas_call(
        kernel,
        out_shape=jax.ShapeDtypeStruct((num_tiles, 8, 128), jnp.float32),
        grid=(num_tiles,),
        in_specs=[
            pl.BlockSpec(memory_space=pltpu.MemorySpace.SMEM),   # n_true scalar
            pl.BlockSpec((tile_n, c), lambda i: (i, 0)),         # logits tile (native dtype)
            pl.BlockSpec((tile_n, 1), lambda i: (i, 0)),         # targets tile
        ],
        out_specs=pl.BlockSpec((1, 8, 128), lambda i: (i, 0, 0)),
        compiler_params=pltpu.CompilerParams(
            dimension_semantics=("parallel",),       # independent tiles -> megacore split
            vmem_limit_bytes=vmem_limit,
        ),
    )(n_true, x, tgt2d)

    return jnp.sum(partials[:, 0, 0]) / n


def _reference(x, target, smoothing):
    logprobs = jax.nn.log_softmax(x, axis=-1)
    nll = -jnp.take_along_axis(logprobs, target[:, None], axis=-1)[:, 0]
    smooth = -jnp.mean(logprobs, axis=-1)
    return jnp.mean((1.0 - smoothing) * nll + smoothing * smooth)


if __name__ == "__main__":
    key = jax.random.PRNGKey(0)
    kx, kt = jax.random.split(key)

    N, C = 20, 32                     # small batch of logits over 32 classes
    smoothing = 0.1

    x = jax.random.normal(kx, (N, C), dtype=jnp.float32)
    target = jax.random.randint(kt, (N,), 0, C, dtype=jnp.int32)

    # Multi-tile + partial-final-block path (no wrapper pad): tile_n=8 -> 3 grid steps,
    # last tile has only 4 valid rows (exercises the row mask and per-tile partial outputs).
    loss_tiled = jax.block_until_ready(label_smoothing_loss(x, target, smoothing, tile_n=8))
    # Auto (byte-based) tile-size path: single tile here.
    loss_auto = jax.block_until_ready(label_smoothing_loss(x, target, smoothing))
    # smoothing == 0.0 specialization (plain NLL path).
    loss_nll = jax.block_until_ready(label_smoothing_loss(x, target, 0.0, tile_n=8))

    ref = _reference(x, target, smoothing)
    ref_nll = _reference(x, target, 0.0)
    assert jnp.allclose(loss_tiled, ref, atol=1e-5, rtol=1e-5), (loss_tiled, ref)
    assert jnp.allclose(loss_auto, ref, atol=1e-5, rtol=1e-5), (loss_auto, ref)
    assert jnp.allclose(loss_nll, ref_nll, atol=1e-5, rtol=1e-5), (loss_nll, ref_nll)

    print("KERNEL_OK")
</pallas_src>

<mosaic_0001>
module attributes {stable_mosaic.version = 11 : i64} {
  func.func @_label_smoothing_kernel(%arg0: i32, %arg1: memref<1xi32, #tpu.memory_space<smem>>, %arg2: memref<8x32xf32, #tpu.memory_space<vmem>>, %arg3: memref<8x1xi32, #tpu.memory_space<vmem>>, %arg4: memref<1x8x128xf32, #tpu.memory_space<vmem>>) attributes {dimension_semantics = [#tpu.dimension_semantics<parallel>], iteration_bounds = array<i64: 3>, scalar_prefetch = 0 : i64, scratch_operands = 0 : i64, tpu.core_type = #tpu.core_type<tc>, window_params = [{transform_indices = @transform_0, window_bounds = array<i64: 1>}, {transform_indices = @transform_1, window_bounds = array<i64: 8, 32>}, {transform_indices = @transform_2, window_bounds = array<i64: 8, 1>}, {transform_indices = @transform_3, window_bounds = array<i64: 1, 8, 128>}]} {
    %c0 = arith.constant 0 : index
    %c0_0 = arith.constant 0 : index
    %0 = vector.load %arg2[%c0, %c0_0] : memref<8x32xf32, #tpu.memory_space<vmem>>, vector<8x32xf32>
    %c0_1 = arith.constant 0 : index
    %c0_2 = arith.constant 0 : index
    %1 = vector.load %arg3[%c0_1, %c0_2] : memref<8x1xi32, #tpu.memory_space<vmem>>, vector<8x1xi32>
    %cst = arith.constant dense<0xFF800000> : vector<8xf32>
    %2 = vector.multi_reduction <maximumf>, %0, %cst [1] : vector<8x32xf32> to vector<8xf32>
    %3 = vector.shape_cast %2 : vector<8xf32> to vector<8x1xf32>
    %4 = vector.broadcast %3 : vector<8x1xf32> to vector<8x32xf32>
    %5 = arith.subf %0, %4 : vector<8x32xf32>
    %6 = math.exp %5 : vector<8x32xf32>
    %cst_3 = arith.constant dense<0.000000e+00> : vector<8xf32>
    %7 = vector.multi_reduction <add>, %6, %cst_3 [1] : vector<8x32xf32> to vector<8xf32>
    %8 = vector.shape_cast %7 : vector<8xf32> to vector<8x1xf32>
    %9 = math.log %8 : vector<8x1xf32>
    %10 = arith.addf %3, %9 : vector<8x1xf32>
    %11 = tpu.iota {dimensions = array<i32: 1>} : vector<1x32xi32>
    %12 = vector.broadcast %11 : vector<1x32xi32> to vector<8x32xi32>
    %13 = vector.broadcast %1 : vector<8x1xi32> to vector<8x32xi32>
    %14 = arith.cmpi eq, %12, %13 : vector<8x32xi32>
    %cst_4 = arith.constant 0.000000e+00 : f32
    %15 = vector.broadcast %cst_4 : f32 to vector<8x32xf32>
    %16 = arith.select %14, %0, %15 : vector<8x32xi1>, vector<8x32xf32>
    %cst_5 = arith.constant dense<0.000000e+00> : vector<8xf32>
    %17 = vector.multi_reduction <add>, %16, %cst_5 [1] : vector<8x32xf32> to vector<8xf32>
    %18 = vector.shape_cast %17 : vector<8xf32> to vector<8x1xf32>
    %cst_6 = arith.constant 0.899999976 : f32
    %19 = vector.broadcast %cst_6 : f32 to vector<8x1xf32>
    %20 = arith.mulf %19, %18 : vector<8x1xf32>
    %21 = arith.subf %10, %20 : vector<8x1xf32>
    %cst_7 = arith.constant dense<0.000000e+00> : vector<8xf32>
    %22 = vector.multi_reduction <add>, %0, %cst_7 [1] : vector<8x32xf32> to vector<8xf32>
    %23 = vector.shape_cast %22 : vector<8xf32> to vector<8x1xf32>
    %cst_8 = arith.constant 3.125000e-03 : f32
    %24 = vector.broadcast %cst_8 : f32 to vector<8x1xf32>
    %25 = arith.mulf %24, %23 : vector<8x1xf32>
    %26 = arith.subf %21, %25 : vector<8x1xf32>
    %27 = tpu.iota {dimensions = array<i32: 0>} : vector<8x1xi32>
    %c8_i32 = arith.constant 8 : i32
    %28 = arith.muli %arg0, %c8_i32 : i32
    %29 = vector.broadcast %28 : i32 to vector<8x1xi32>
    %30 = arith.addi %27, %29 : vector<8x1xi32>
    %c0_9 = arith.constant 0 : index
    %31 = memref.load %arg1[%c0_9] : memref<1xi32, #tpu.memory_space<smem>>
    %32 = vector.broadcast %31 : i32 to vector<8x1xi32>
    %33 = arith.cmpi slt, %30, %32 : vector<8x1xi32>
    %cst_10 = arith.constant 0.000000e+00 : f32
    %34 = vector.broadcast %cst_10 : f32 to vector<8x1xf32>
    %35 = arith.select %33, %26, %34 : vector<8x1xi1>, vector<8x1xf32>
    %36 = vector.shape_cast %35 : vector<8x1xf32> to vector<1x8x1xf32>
    %cst_11 = arith.constant dense<0.000000e+00> : vector<1xf32>
    %37 = vector.multi_reduction <add>, %36, %cst_11 [1, 2] : vector<1x8x1xf32> to vector<1xf32>
    %38 = vector.shape_cast %37 : vector<1xf32> to vector<1x1x1xf32>
    %39 = vector.extract %38[0, 0, 0] : f32 from vector<1x1x1xf32>
    %40 = vector.broadcast %39 : f32 to vector<1x8x128xf32>
    %c0_12 = arith.constant 0 : index
    %c0_13 = arith.constant 0 : index
    %c0_14 = arith.constant 0 : index
    %41 = vector.load %arg4[%c0_12, %c0_13, %c0_14] : memref<1x8x128xf32, #tpu.memory_space<vmem>>, vector<1x8x128xf32>
    tpu.vector_store %arg4[%c0_12, %c0_13, %c0_14], %40 {strides = array<i32>} : memref<1x8x128xf32, #tpu.memory_space<vmem>>, vector<1x8x128xf32>,
    return
  }
  func.func @transform_0(%arg0: i32) -> i32 {
    %c0_i32 = arith.constant 0 : i32
    %c0_i32_0 = arith.constant 0 : i32
    return %c0_i32 : i32
  }
  func.func @transform_1(%arg0: i32) -> (i32, i32) {
    %c0_i32 = arith.constant 0 : i32
    %c0_i32_0 = arith.constant 0 : i32
    return %arg0, %c0_i32 : i32, i32
  }
  func.func @transform_2(%arg0: i32) -> (i32, i32) {
    %c0_i32 = arith.constant 0 : i32
    %c0_i32_0 = arith.constant 0 : i32
    return %arg0, %c0_i32 : i32, i32
  }
  func.func @transform_3(%arg0: i32) -> (i32, i32, i32) {
    %c0_i32 = arith.constant 0 : i32
    %c0_i32_0 = arith.constant 0 : i32
    %c0_i32_1 = arith.constant 0 : i32
    return %arg0, %c0_i32, %c0_i32_0 : i32, i32, i32
  }
}

</mosaic_0001>

<bundles_post_ra>
// kernel: tpu_custom_call.1
= control target key start
LH: loop header
LB: loop body
LE: loop exit
PB: predicated region body
PF: predicated region fallthrough
CT: control target
= control target key end

     0   :  { %s579_s0 = inlined_call_operand.<no memory space> [shape: s32[1], index: 0, kind: input, shape index: {}]   ;;  %s580_s1 = inlined_call_operand.vmem [shape: f32[20,32], index: 1, kind: input, shape index: {}]   ;;  %s581_s2 = inlined_call_operand.vmem [shape: s32[20,1], index: 2, kind: input, shape index: {}]   ;;  %s582_s3 = inlined_call_operand.hbm [shape: f32[3,8,128], index: 3, kind: output, shape index: {}]  }
   0x1   :  { %8 = sst [smem:[#allocation2]] %s579_s0 }
   0x2   :  { %9 = vsyncpa [#allocation4], 0 }
   0x3   :  { %11 = vsyncpa [#allocation4 + $0x1], 0  ;;  %s471_s14 = smov 0   ;;  %s473_s15 = smov 0  }
   0x4   :  { %s475_s16 = smov 0   ;;  %s477_s17 = smov 0  }
   0x5 LB: > { %s492_s0 = sadd.s32 4294967295, %s444_s17   ;;  %s323_s18 = sadd.s32 4294967294, %s444_s17   ;;  %s444_s17 = sphi %s477_s17, %s588_s17   ;;  %s440_s16 = sphi %s475_s16, %s587_s16   ;;  %s436_s15 = sphi %s473_s15, %s586_s15   ;;  %s432_s14 = sphi %s471_s14, %s585_s14  }
   0x6   : > { %s496_s19 = sadd.s32 1, %s444_s17   ;;  %s97_s20 = sadd.s32 1, %s440_s16 }
   0x7   : > { %s94_s21 = ssub.s32 %s444_s17, %s496_s19  ;;  %p107_p0 = scmp.ne.s32.totalorder %s440_s16, %s436_s15 }
   0x8   : > { %p95_p1 = scmp.eq.s32.totalorder %s94_s21, 0  ;;  %p108_p2 = scmp.eq.s32.totalorder %s492_s0, 2 }
   0x9   : > { %p113_p3 = scmp.ne.s32.totalorder %s436_s15, %s432_s14  ;;  %p114_p4 = scmp.eq.s32.totalorder %s323_s18, 2 }
   0xa   : > { %s507_s22 = scalar_select %p95_p1, %s440_s16, %s97_s20  }
   0xb   : > { %p509_p5 = por %p108_p2, %p107_p0  ;;  %p513_p6 = por %p114_p4, %p113_p3 }
   0xc   : > { %p326_p7 = scmp.ge.s32.totalorder %s444_s17, 1  ;;  %p149_p8 = scmp.lt.s32.totalorder %s444_s17, 4 }
   0xe   : > { %p150_p9 = pnand %p326_p7, %p149_p8 }
   0xf   : > { %p176_p10 = scmp.lt.s32.totalorder (!%p150_p9), %s492_s0, 2  ;;  %v446_v0 = vmov (!%p150_p9), 0   ;;  %vm186_vm0 = vcmask (!%p150_p9), 261120   ;;  %v199_v7 = vlaneseq (!%p150_p9)  ;;  %s221_s6 = sld [smem:[#allocation2]] (!%p150_p9)  ;;  %vm225_vm3 = vcmask (!%p150_p9), 7168  }
  0x10   : > { %153 = sbr.rel (%p150_p9) target bundleno = 569 (0x239), region = 32  ;;  %377 = vset.pattern.permute.xlu0 (!%p150_p9), %v446_v0  ;;  %s330_s7 = sshll.u32 (!%p150_p9), %s492_s0, 3 }
  0x11   : > { %v200_v8 = vand.u32 (!%p150_p9), 127, %v199_v7  ;;  %v217_v17 = vshrl.u32 (!%p150_p9), %v199_v7, 7  ;;  %v219_v18 = vstv (!%p150_p9), %s330_s7  ;;  %s173_s8 = sand.u32 (!%p150_p9), 1, %s436_s15   ;;  %s332_s12 = sshll.u32 (!%p150_p9), %s492_s0, 7 }
  0x12   : > { %s327_s9 = sshll.u32 (!%p150_p9), %s173_s8, 3  ;;  %s539_s21 = scalar_lea.hbm (!%p150_p9), %s582_s3, %s332_s12 }
  0x13   : > { %v220_v22 = vadd.s32 (!%p150_p9), %v219_v18, %v217_v17  ;;  %s175_s10 = scalar_lea.vmem (!%p150_p9), [#allocation3], %s327_s9 }
  0x14   : > { %s252_s11 = sshll.u32 (!%p150_p9), %s175_s10, 4  ;;  %s534_s11 = int_to_ptr.vmem [resolvable:$true] %s252_s11 }
  0x15   : > { %v222_v26 = vstv (!%p150_p9), %s221_s6 }
  0x16   : > { %vm223_vm2 = vcmp.lt.s32.totalorder (!%p150_p9), %v220_v22, %v222_v26 }
  0x17   : > { %s177_s25 = scalar_select %p176_p10, %s492_s0, 2 }
  0x18   : > { %s447_s0 = smov [#allocation3]  }
  0x19   : > { %s328_s26 = sshll.u32 %s177_s25, 3  ;;  %s239_s25 = scalar_lea.sflag [#allocation4], %s173_s8 }
  0x1a   : > { %s179_s29 = scalar_lea.vmem %s580_s1, %s328_s26  ;;  %s183_s5 = scalar_lea.vmem %s581_s2, %s328_s26 }
  0x1b   : > { %v184_v1 = vld [vmem:[%s179_s29] sm:$0xff]  ;;  %s382_s26 = scalar_lea.vmem %s534_s11, 128  ;;  %s386_s27 = sshll.u32 %s447_s0, 4  ;;  %s387_s27 = int_to_ptr.vmem [resolvable:$false] %s386_s27 }
  0x1c   : > { %v187_v2 = vsel %vm186_vm0, %v184_v1, -inf  ;;  %v185_v3 = vld [vmem:[%s183_s5] sm:$0xff]  ;;  %v211_v14 = vsel %vm186_vm0, %v184_v1, 0.0  ;;  %p383_p11 = scmp.ne.s32.totalorder %s534_s11, %s382_s26  ;;  %s388_s28 = scalar_lea.vmem %s387_s27, 256 }
  0x1d   : > { %188 = vmax.xlane.f32.xlu0 %v187_v2  ;;  %p389_p0 = scmp.lt.s32.totalorder %s534_s11, %s387_s27  ;;  %p390_p1 = scmp.lt.s32.totalorder %s388_s28, %s382_s26 }
  0x1e   : > { %p384_p12 = pnand %p383_p11, %p509_p5 }
  0x1f   : > { %p391_p2 = por %p390_p1, %p389_p0 }
  0x20   : > { %p385_p13 = pneg %p384_p12 }
  0x22   : > { %p392_p3 = pnand %p391_p2, %p385_p13 }
  0x33   : > { %202 = vperm.xlu0 %377, %v185_v3  }
  0xaa   : > { %v189_v4 = vpop.xlane.xlu0 %188 }
  0xab   : > { %v190_v5 = vsub.f32 %v184_v1, %v189_v4 }
  0xad   : > { %v191_v6 = vmul.f32 1.442695, %v190_v5 }
  0xaf   : > { %378 = vpow2.f32 %v191_v6 }
  0xb2   : > { %v203_v9 = vpop.permute.xlu0 %202 }
  0xb3   : > { %vm204_vm1 = vcmp.eq.s32.totalorder %v200_v8, %v203_v9 }
  0xb4   : > { %v205_v11 = vsel %vm204_vm1, %v184_v1, 0.0 }
  0xb5   : > { %v206_v13 = vsel %vm186_vm0, %v205_v11, 0.0 }
  0xb9   : > { %v379_v10 = vpop.eup %378 }
  0xba   : > { %v193_v12 = vsel %vm186_vm0, %v379_v10, 0.0 }
  0xbb   : > { %194 = vadd.xlane.f32.xlu1 %v193_v12 }
  0xbf   : > { %207 = vadd.xlane.f32.xlu1 %v206_v13 }
  0xc3   : > { %212 = vadd.xlane.f32.xlu1 %v211_v14 }
 0x148   : > { %v195_v15 = vpop.xlane.xlu1 %194 }
 0x149   : > { %380 = vlog2.f32 %v195_v15 }
 0x14c   : > { %v208_v16 = vpop.xlane.xlu1 %207 }
 0x14d   : > { %v209_v24 = vmul.f32 0.9, %v208_v16 }
 0x150   : > { %v213_v20 = vpop.xlane.xlu1 %212 }
 0x151   : > { %v214_v25 = vmul.f32 0.003125, %v213_v20 }
 0x153   : > { %v381_v19 = vpop.eup %380 }
 0x154   : > { %v197_v21 = vmul.f32 0.6931472, %v381_v19 }
 0x156   : > { %v198_v23 = vadd.f32 %v197_v21, %v189_v4 }
 0x158   : > { %v210_v27 = vsub.f32 %v198_v23, %v209_v24 }
 0x15a   : > { %v215_v28 = vsub.f32 %v210_v27, %v214_v25 }
 0x15c   : > { %v224_v29 = vsel %vm223_vm2, %v215_v28, 0.0 }
 0x15d   : > { %v226_v30 = vsel %vm225_vm3, %v224_v29, 0.0 }
 0x15e   : > { %227 = vadd.xlane.f32.xlu1 %v226_v30 }
 0x1eb   : > { %v228_v31 = vpop.xlane.xlu1 %227 }
 0x1ec   : > { %v229_v32 = vrot.slane %v228_v31, 4 }
 0x1ee   : > { %v230_v33 = vadd.f32 %v229_v32, %v228_v31 }
 0x1f0   : > { %v231_v34 = vrot.slane %v230_v33, 2 }
 0x1f2   : > { %v232_v35 = vadd.f32 %v231_v34, %v230_v33 }
 0x1f4   : > { %v233_v36 = vrot.slane %v232_v35, 1 }
 0x1f6   : > { %v234_v37 = vadd.f32 %v233_v36, %v232_v35 }
 0x1f8   : > { %335 = vpush %v234_v37 }
 0x229   : > { %s336_s13 = spop %335 }
 0x22a   : > { %v236_v38 = vstv %s336_s13 }
 0x22b   : > { %237 = vst [vmem:[%s175_s10] sm:$0xff] %v236_v38 }
 0x22c   : > { %395 = shalt.err (!%p392_p3)
}
 0x22d   : > { %s396_s29 = scalar_lea.hbm %s539_s21, 128  ;;  %s400_s5 = scalar_lea.hbm %s582_s3, 384 }
 0x22e   : > { %p397_p4 = scmp.ne.s32.totalorder %s539_s21, %s396_s29  ;;  %p401_p9 = scmp.lt.u32.totalorder %s539_s21, %s582_s3 }
 0x22f   : > { %p402_p10 = scmp.lt.u32.totalorder %s400_s5, %s396_s29  ;;  %p404_p12 = scmp.lt.u32.totalorder %s396_s29, %s539_s21 }
 0x230   : > { %p398_p7 = pnand %p397_p4, %p509_p5 }
 0x231   : > { %p403_p11 = por %p402_p10, %p401_p9 }
 0x232   : > { %p399_p8 = pneg %p398_p7 }
 0x233   : > { %p405_p13 = por %p404_p12, %p403_p11 }
 0x235   : > { %p406_p0 = pnand %p405_p13, %p399_p8 }
 0x237   : > { %409 = shalt.err (!%p406_p0)
}
 0x238   : > { %337 = dma.vmem_to_hbm [thread:$0]  (%p509_p5), %s534_s11, 128, %s539_s21, %s239_s25  }
 0x239 PF: > { %p343_p1 = scmp.ge.s32.totalorder %s444_s17, 2  ;;  %s264_s8 = sand.u32 1, %s432_s14  }
 0x23a   : > { %s265_s9 = scalar_lea.sflag [#allocation4], %s264_s8 }
 0x23b   : > { %p340_p2 = pnand %p343_p1, %p513_p6 }
 0x23d   : > { %427 = dma.done.wait (!%p340_p2), %s265_s9, 128  }
 0x23e   : > { %429 = vsyncadd (!%p340_p2), %s265_s9, 4294967168  ;;  %p14_p3 = scmp.ge.s32.totalorder %s496_s19, 5   ;;  %s585_s14 = smov %s436_s15 }
 0x23f   : > { %s586_s15 = smov %s440_s16  ;;  %s587_s16 = smov %s507_s22 }
 0x240   : > { %s588_s17 = smov %s496_s19  ;;  %16 = sbr.rel (!%p14_p3) target bundleno = 5 (0x5), region = 70 }
 0x247   :  { %270 = vsyncpa [#allocation4], 1 }
 0x248   :  { %272 = vsyncpa [#allocation4 + $0x1], 1 }

</bundles_post_ra>
